<compile_context>
chip_gen: v5e
topology: v5e:2x2
jax: 0.10.0
libtpu: 0.0.40
codegen_flags: <defaults>
</compile_context>

<pallas_src>
import jax
import jax.numpy as jnp
from jax.experimental import pallas as pl
from jax.experimental.pallas import tpu as pltpu


def _round_up(x: int, m: int) -> int:
    return ((x + m - 1) // m) * m


def _vmem_budget_cap() -> int:
    """Generation-aware VMEM cap: ~48 MiB on 64 MiB/TC parts (v7x),
    up to 96 MiB on 128 MiB parts (v5e/v6e). Safe default if query fails."""
    default = 48 * 1024 * 1024
    try:
        info = pltpu.get_tpu_info()
        cap = getattr(info, "vmem_capacity_bytes", None)
        if cap:
            return int(min(int(cap) * 3 // 4, 96 * 1024 * 1024))
    except Exception:
        pass
    return default


def _choose_tile(n_rows: int, n_classes: int, in_item: int, out_item: int,
                 budget_cap: int, block_rows):
    """Pick the row-tile TM (multiple of 8). Returns (tm, vmem_est, tiny_tile)."""
    if block_rows is not None:
        tm_budget = max(8, (int(block_rows) // 8) * 8)
    else:
        # ~8 MiB of HBM traffic per grid step amortizes the ~0.35 us step cost.
        stream_bytes_per_row = n_classes * (in_item + out_item)
        tm_budget = (8 * 1024 * 1024) // max(stream_bytes_per_row, 1)
        tm_budget = max(8, min(2048, (tm_budget // 8) * 8))

    def vmem_est(t):
        # double-buffered in/out blocks + ~3 live (TM, C) f32 temporaries + margin
        return (2 * t * n_classes * in_item
                + 2 * t * n_classes * out_item
                + 3 * t * n_classes * 4
                + (1 << 20))

    while tm_budget > 8 and vmem_est(tm_budget) > budget_cap:
        tm_budget = max(8, ((tm_budget // 2) // 8) * 8)

    # tiny tile forced by a huge vocab (not by a small batch / user override)
    tiny_tile = (block_rows is None) and tm_budget <= 16

    tm = max(8, min(tm_budget, _round_up(n_rows, 8)))
    return tm, vmem_est(tm), tiny_tile


def _make_kernels(n_rows: int, n_classes: int, tm: int, smoothing: float):
    smooth_w = float(smoothing) / float(n_classes)
    conf_w = 1.0 - float(smoothing)

    def _compute(preds_ref, target_ref):
        # log-softmax pieces, f32 internal math
        x = preds_ref[...].astype(jnp.float32)                       # (TM, C)
        m = jnp.max(x, axis=-1, keepdims=True)                       # (TM, 1)
        shifted = x - m                                              # (TM, C)
        log_z = jnp.log(jnp.sum(jnp.exp(shifted), axis=-1, keepdims=True))  # (TM,1)

        # Fused smoothed loss via sum(w) = 1 identity, on `shifted` (not logp):
        #   per_row = logZ - (s/C) * sum_c shifted - (1-s) * shifted[target]
        shifted_sum = jnp.sum(shifted, axis=-1, keepdims=True)       # (TM, 1)
        cls_ids = jax.lax.broadcasted_iota(jnp.int32, (1, n_classes), 1)
        tgt_shifted = jnp.sum(
            jnp.where(cls_ids == target_ref[...], shifted, 0.0),
            axis=-1, keepdims=True)                                  # (TM, 1)
        per_row = log_z - smooth_w * shifted_sum - conf_w * tgt_shifted

        # Mask rows of the (possibly partial) last block out of the loss.
        row_ids = (pl.program_id(0) * tm
                   + jax.lax.broadcasted_iota(jnp.int32, (tm, 1), 0))
        per_row = jnp.where(row_ids < n_rows, per_row, 0.0)
        tile_sum = jnp.sum(per_row)                                  # scalar f32
        return shifted, log_z, tile_sum

    def kernel_with_logp(preds_ref, target_ref, logp_ref, partial_ref):
        shifted, log_z, tile_sum = _compute(preds_ref, target_ref)
        logp_ref[...] = (shifted - log_z).astype(logp_ref.dtype)
        partial_ref[...] = jnp.broadcast_to(tile_sum, (1, 128))

    def kernel_loss_only(preds_ref, target_ref, partial_ref):
        _, _, tile_sum = _compute(preds_ref, target_ref)
        partial_ref[...] = jnp.broadcast_to(tile_sum, (1, 128))

    return kernel_with_logp, kernel_loss_only


def label_smoothing_loss(preds, target, smoothing: float = 0.1,
                         reduction: str = 'mean', block_rows: int | None = None,
                         return_log_preds: bool = True, log_preds_dtype=None):
    """JAX/Pallas equivalent of LabelSmoothingLoss.forward.

    preds:  (N, C) float logits
    target: (N,)   int labels
    returns (loss, log_preds) if return_log_preds else loss.
    """
    assert 0.0 <= smoothing < 1.0
    if reduction not in ('mean', 'sum'):
        # TODO(synk): 'none' reduction (per-element loss) not implemented.
        raise NotImplementedError("reduction must be 'mean' or 'sum'")
    assert preds.ndim == 2 and target.shape == (preds.shape[0],)

    n_rows, n_classes = preds.shape
    logp_dtype = jnp.dtype(log_preds_dtype) if log_preds_dtype is not None else preds.dtype
    in_item = jnp.dtype(preds.dtype).itemsize
    out_item = jnp.dtype(logp_dtype).itemsize if return_log_preds else 0

    budget_cap = _vmem_budget_cap()
    tm, vmem_est, tiny_tile = _choose_tile(n_rows, n_classes, in_item, out_item,
                                           budget_cap, block_rows)
    num_tiles = pl.cdiv(n_rows, tm)
    vmem_limit = int(min(budget_cap, max(32 * 1024 * 1024, vmem_est)))

    # targets as a (N, 1) int32 column -> (TM, 1) VMEM blocks (tiny DMA).
    target_col = target.astype(jnp.int32).reshape(n_rows, 1)

    kernel_with_logp, kernel_loss_only = _make_kernels(n_rows, n_classes, tm, smoothing)

    preds_spec = pl.BlockSpec((tm, n_classes), lambda i: (i, 0))
    if tiny_tile:
        # huge vocab forced TM<=16: deepen buffering to hide DMA issue latency
        preds_spec = pl.BlockSpec((tm, n_classes), lambda i: (i, 0),
                                  pipeline_mode=pl.Buffered(3))
    in_specs = [preds_spec, pl.BlockSpec((tm, 1), lambda i: (i, 0))]

    partial_shape = jax.ShapeDtypeStruct((1, 128 * num_tiles), jnp.float32)
    partial_spec = pl.BlockSpec((1, 128), lambda i: (0, i))

    cparams = pltpu.CompilerParams(
        dimension_semantics=("parallel",),
        vmem_limit_bytes=vmem_limit,
    )

    if return_log_preds:
        logp, partials = pl.pallas_call(
            kernel_with_logp,
            out_shape=(jax.ShapeDtypeStruct((n_rows, n_classes), logp_dtype),
                       partial_shape),
            grid=(num_tiles,),
            in_specs=in_specs,
            out_specs=(pl.BlockSpec((tm, n_classes), lambda i: (i, 0)),
                       partial_spec),
            compiler_params=cparams,
        )(preds, target_col)
    else:
        partials = pl.pallas_call(
            kernel_loss_only,
            out_shape=partial_shape,
            grid=(num_tiles,),
            in_specs=in_specs,
            out_specs=partial_spec,
            compiler_params=cparams,
        )(preds, target_col)
        logp = None

    total = jnp.sum(partials[0, ::128])
    loss = total / n_rows if reduction == 'mean' else total
    return (loss, logp) if return_log_preds else loss


def _reference(preds, target, smoothing=0.1, reduction='mean'):
    """Pure-JAX reference (mirrors the PyTorch module)."""
    n = preds.shape[-1]
    logp = jax.nn.log_softmax(preds.astype(jnp.float32), axis=-1)
    red = jnp.mean if reduction == 'mean' else jnp.sum
    loss = red(-logp.sum(axis=-1)) / n
    nll = red(-jnp.take_along_axis(logp, target[:, None], axis=-1)[:, 0])
    return smoothing * loss + (1.0 - smoothing) * nll, logp.astype(preds.dtype)


if __name__ == "__main__":
    key = jax.random.PRNGKey(0)
    k1, k2, k3, k4, k5, k6 = jax.random.split(key, 6)

    # Case 1: small, non-128-aligned class count, single tile, f32, 'mean'.
    N, C = 8, 32
    preds = jax.random.normal(k1, (N, C), dtype=jnp.float32)
    target = jax.random.randint(k2, (N,), 0, C, dtype=jnp.int32)
    loss, log_preds = label_smoothing_loss(preds, target, smoothing=0.1,
                                           reduction='mean')
    jax.block_until_ready((loss, log_preds))
    ref_loss, ref_logp = _reference(preds, target, smoothing=0.1, reduction='mean')
    assert jnp.allclose(loss, ref_loss, atol=1e-5, rtol=1e-5), (loss, ref_loss)
    assert jnp.allclose(log_preds, ref_logp, atol=1e-5, rtol=1e-5)

    # Case 2: multi-tile grid with PARTIAL last row block (no wrapper padding),
    # non-128-aligned classes, 'sum' reduction; also the loss-only fast path.
    N2, C2 = 70, 200
    preds2 = jax.random.normal(k3, (N2, C2), dtype=jnp.float32)
    target2 = jax.random.randint(k4, (N2,), 0, C2, dtype=jnp.int32)
    loss2, logp2 = label_smoothing_loss(preds2, target2, smoothing=0.2,
                                        reduction='sum', block_rows=32)
    loss2b = label_smoothing_loss(preds2, target2, smoothing=0.2,
                                  reduction='sum', block_rows=32,
                                  return_log_preds=False)
    jax.block_until_ready((loss2, logp2, loss2b))
    ref_loss2, ref_logp2 = _reference(preds2, target2, smoothing=0.2,
                                      reduction='sum')
    assert jnp.allclose(loss2, ref_loss2, atol=1e-3, rtol=1e-5), (loss2, ref_loss2)
    assert jnp.allclose(logp2, ref_logp2, atol=1e-5, rtol=1e-5)
    assert jnp.allclose(loss2b, loss2, atol=1e-4, rtol=1e-6), (loss2b, loss2)

    # Case 3: bf16 inputs (bf16 logp out), partial last block, 'mean'.
    N3, C3 = 40, 160
    preds3 = jax.random.normal(k5, (N3, C3), dtype=jnp.bfloat16)
    target3 = jax.random.randint(k6, (N3,), 0, C3, dtype=jnp.int32)
    loss3, logp3 = label_smoothing_loss(preds3, target3, smoothing=0.1,
                                        reduction='mean', block_rows=16)
    jax.block_until_ready((loss3, logp3))
    ref_loss3, ref_logp3 = _reference(preds3, target3, smoothing=0.1,
                                      reduction='mean')
    assert jnp.allclose(loss3, ref_loss3, atol=5e-3, rtol=5e-3), (loss3, ref_loss3)
    assert jnp.allclose(logp3.astype(jnp.float32), ref_logp3.astype(jnp.float32),
                        atol=0.1, rtol=0.02)

    print("KERNEL_OK")
</pallas_src>

<mosaic_0001>
module attributes {stable_mosaic.version = 11 : i64} {
  func.func @kernel_with_logp(%arg0: i32, %arg1: memref<8x32xf32, #tpu.memory_space<vmem>>, %arg2: memref<8x1xi32, #tpu.memory_space<vmem>>, %arg3: memref<8x32xf32, #tpu.memory_space<vmem>>, %arg4: memref<1x128xf32, #tpu.memory_space<vmem>>) attributes {dimension_semantics = [#tpu.dimension_semantics<parallel>], iteration_bounds = array<i64: 1>, scalar_prefetch = 0 : i64, scratch_operands = 0 : i64, tpu.core_type = #tpu.core_type<tc>, window_params = [{transform_indices = @transform_0, window_bounds = array<i64: 8, 32>}, {transform_indices = @transform_1, window_bounds = array<i64: 8, 1>}, {transform_indices = @transform_2, window_bounds = array<i64: 8, 32>}, {transform_indices = @transform_3, window_bounds = array<i64: 1, 128>}]} {
    %c0 = arith.constant 0 : index
    %c0_0 = arith.constant 0 : index
    %0 = vector.load %arg1[%c0, %c0_0] : memref<8x32xf32, #tpu.memory_space<vmem>>, vector<8x32xf32>
    %cst = arith.constant dense<0xFF800000> : vector<8xf32>
    %1 = vector.multi_reduction <maximumf>, %0, %cst [1] : vector<8x32xf32> to vector<8xf32>
    %2 = vector.shape_cast %1 : vector<8xf32> to vector<8x1xf32>
    %3 = vector.broadcast %2 : vector<8x1xf32> to vector<8x32xf32>
    %4 = arith.subf %0, %3 : vector<8x32xf32>
    %5 = math.exp %4 : vector<8x32xf32>
    %cst_1 = arith.constant dense<0.000000e+00> : vector<8xf32>
    %6 = vector.multi_reduction <add>, %5, %cst_1 [1] : vector<8x32xf32> to vector<8xf32>
    %7 = vector.shape_cast %6 : vector<8xf32> to vector<8x1xf32>
    %8 = math.log %7 : vector<8x1xf32>
    %cst_2 = arith.constant dense<0.000000e+00> : vector<8xf32>
    %9 = vector.multi_reduction <add>, %4, %cst_2 [1] : vector<8x32xf32> to vector<8xf32>
    %10 = vector.shape_cast %9 : vector<8xf32> to vector<8x1xf32>
    %11 = tpu.iota {dimensions = array<i32: 1>} : vector<1x32xi32>
    %c0_3 = arith.constant 0 : index
    %c0_4 = arith.constant 0 : index
    %12 = vector.load %arg2[%c0_3, %c0_4] : memref<8x1xi32, #tpu.memory_space<vmem>>, vector<8x1xi32>
    %13 = vector.broadcast %11 : vector<1x32xi32> to vector<8x32xi32>
    %14 = vector.broadcast %12 : vector<8x1xi32> to vector<8x32xi32>
    %15 = arith.cmpi eq, %13, %14 : vector<8x32xi32>
    %cst_5 = arith.constant 0.000000e+00 : f32
    %16 = vector.broadcast %cst_5 : f32 to vector<8x32xf32>
    %17 = arith.select %15, %4, %16 : vector<8x32xi1>, vector<8x32xf32>
    %cst_6 = arith.constant dense<0.000000e+00> : vector<8xf32>
    %18 = vector.multi_reduction <add>, %17, %cst_6 [1] : vector<8x32xf32> to vector<8xf32>
    %19 = vector.shape_cast %18 : vector<8xf32> to vector<8x1xf32>
    %cst_7 = arith.constant 3.125000e-03 : f32
    %20 = vector.broadcast %cst_7 : f32 to vector<8x1xf32>
    %21 = arith.mulf %20, %10 : vector<8x1xf32>
    %22 = arith.subf %8, %21 : vector<8x1xf32>
    %cst_8 = arith.constant 0.899999976 : f32
    %23 = vector.broadcast %cst_8 : f32 to vector<8x1xf32>
    %24 = arith.mulf %23, %19 : vector<8x1xf32>
    %25 = arith.subf %22, %24 : vector<8x1xf32>
    %c8_i32 = arith.constant 8 : i32
    %26 = arith.muli %arg0, %c8_i32 : i32
    %27 = tpu.iota {dimensions = array<i32: 0>} : vector<8x1xi32>
    %28 = vector.broadcast %26 : i32 to vector<8x1xi32>
    %29 = arith.addi %28, %27 : vector<8x1xi32>
    %c8_i32_9 = arith.constant 8 : i32
    %30 = vector.broadcast %c8_i32_9 : i32 to vector<8x1xi32>
    %31 = arith.cmpi slt, %29, %30 : vector<8x1xi32>
    %cst_10 = arith.constant 0.000000e+00 : f32
    %32 = vector.broadcast %cst_10 : f32 to vector<8x1xf32>
    %33 = arith.select %31, %25, %32 : vector<8x1xi1>, vector<8x1xf32>
    %34 = vector.shape_cast %33 : vector<8x1xf32> to vector<1x8x1xf32>
    %cst_11 = arith.constant dense<0.000000e+00> : vector<1xf32>
    %35 = vector.multi_reduction <add>, %34, %cst_11 [1, 2] : vector<1x8x1xf32> to vector<1xf32>
    %36 = vector.shape_cast %35 : vector<1xf32> to vector<1x1x1xf32>
    %37 = vector.extract %36[0, 0, 0] : f32 from vector<1x1x1xf32>
    %38 = vector.broadcast %8 : vector<8x1xf32> to vector<8x32xf32>
    %39 = arith.subf %4, %38 : vector<8x32xf32>
    %c0_12 = arith.constant 0 : index
    %c0_13 = arith.constant 0 : index
    %40 = vector.load %arg3[%c0_12, %c0_13] : memref<8x32xf32, #tpu.memory_space<vmem>>, vector<8x32xf32>
    tpu.vector_store %arg3[%c0_12, %c0_13], %39 {strides = array<i32>} : memref<8x32xf32, #tpu.memory_space<vmem>>, vector<8x32xf32>,
    %41 = vector.broadcast %37 : f32 to vector<1x128xf32>
    %c0_14 = arith.constant 0 : index
    %c0_15 = arith.constant 0 : index
    %42 = vector.load %arg4[%c0_14, %c0_15] : memref<1x128xf32, #tpu.memory_space<vmem>>, vector<1x128xf32>
    tpu.vector_store %arg4[%c0_14, %c0_15], %41 {strides = array<i32>} : memref<1x128xf32, #tpu.memory_space<vmem>>, vector<1x128xf32>,
    return
  }
  func.func @transform_0(%arg0: i32) -> (i32, i32) {
    %c0_i32 = arith.constant 0 : i32
    %c0_i32_0 = arith.constant 0 : i32
    return %arg0, %c0_i32 : i32, i32
  }
  func.func @transform_1(%arg0: i32) -> (i32, i32) {
    %c0_i32 = arith.constant 0 : i32
    %c0_i32_0 = arith.constant 0 : i32
    return %arg0, %c0_i32 : i32, i32
  }
  func.func @transform_2(%arg0: i32) -> (i32, i32) {
    %c0_i32 = arith.constant 0 : i32
    %c0_i32_0 = arith.constant 0 : i32
    return %arg0, %c0_i32 : i32, i32
  }
  func.func @transform_3(%arg0: i32) -> (i32, i32) {
    %c0_i32 = arith.constant 0 : i32
    %c0_i32_0 = arith.constant 0 : i32
    return %c0_i32, %arg0 : i32, i32
  }
}

</mosaic_0001>

<bundles_post_ra>
// kernel: tpu_custom_call.1
= control target key start
LH: loop header
LB: loop body
LE: loop exit
PB: predicated region body
PF: predicated region fallthrough
CT: control target
= control target key end

     0   :  { %9 = vsyncpa [#allocation3], 0  ;;  %vm16_vm0 = vcmask 261120   ;;  %s202_s0 = inlined_call_operand.vmem [shape: f32[8,32], index: 0, kind: input, shape index: {}]   ;;  %s203_s1 = inlined_call_operand.vmem [shape: s32[8,1], index: 1, kind: input, shape index: {}]   ;;  %s204_s2 = inlined_call_operand.hbm [shape: f32[8,32], index: 2, kind: output, shape index: {0}]   ;;  %s205_s3 = inlined_call_operand.hbm [shape: f32[1,128], index: 3, kind: output, shape index: {1}]  }
   0x1   :  { %v15_v0 = vld [vmem:[%s202_s0] sm:$0xff] }
   0x2   :  { %10 = vsyncpa [#allocation5], 0  ;;  %v17_v1 = vsel %vm16_vm0, %v15_v0, -inf  ;;  %v162_v2 = vmov 0   ;;  %v33_v3 = vld [vmem:[%s203_s1] sm:$0xff]  ;;  %v31_v9 = vlaneseq  ;;  %vm53_vm2 = vcmask 7168  }
   0x3   :  { %105 = vset.pattern.permute.xlu0 %v162_v2  ;;  %s163_s0 = smov [#allocation2]   ;;  %s75_s18 = sshll.u32 %s204_s2, 4  ;;  %s76_s18 = int_to_ptr.hbm [resolvable:$true] %s75_s18 }
   0x4   :  { %18 = vmax.xlane.f32.xlu0 %v17_v1  ;;  %v32_v10 = vand.u32 127, %v31_v9  ;;  %s73_s1 = sshll.u32 %s163_s0, 4  ;;  %s164_s19 = smov [#allocation4]   ;;  %s74_s1 = int_to_ptr.vmem [resolvable:$true] %s73_s1 }
   0x5   :  { %s84_s20 = sshll.u32 %s164_s19, 4  ;;  %s86_s23 = sshll.u32 %s205_s3, 4  ;;  %s85_s20 = int_to_ptr.vmem [resolvable:$true] %s84_s20  ;;  %s87_s23 = int_to_ptr.hbm [resolvable:$true] %s86_s23 }
  0x18   :  { %35 = vperm.xlu0 %105, %v33_v3  }
  0x77   :  { %v19_v4 = vpop.xlane.xlu0 %18 }
  0x78   :  { %v20_v5 = vsub.f32 %v15_v0, %v19_v4 }
  0x7a   :  { %v21_v6 = vmul.f32 1.442695, %v20_v5  ;;  %v28_v12 = vsel %vm16_vm0, %v20_v5, 0.0 }
  0x7c   :  { %106 = vpow2.f32 %v21_v6 }
  0x82   :  { %v107_v7 = vpop.eup %106 }
  0x83   :  { %v23_v8 = vsel %vm16_vm0, %v107_v7, 0.0 }
  0x84   :  { %24 = vadd.xlane.f32.xlu1 %v23_v8 }
  0x8a   :  { %v36_v11 = vpop.permute.xlu0 %35 }
  0x8b   :  { %vm37_vm1 = vcmp.eq.s32.totalorder %v32_v10, %v36_v11 }
  0x8c   :  { %29 = vadd.xlane.f32.xlu1 %v28_v12  ;;  %v38_v13 = vsel %vm37_vm1, %v20_v5, 0.0 }
  0x8d   :  { %v39_v14 = vsel %vm16_vm0, %v38_v13, 0.0 }
  0x8e   :  { %40 = vadd.xlane.f32.xlu2 %v39_v14 }
  0xf7   :  { %v25_v15 = vpop.xlane.xlu1 %24 }
  0xf8   :  { %108 = vlog2.f32 %v25_v15 }
  0xfe   :  { %v109_v16 = vpop.eup %108 }
  0xff   :  { %v27_v17 = vmul.f32 0.6931472, %v109_v16  ;;  %v30_v18 = vpop.xlane.xlu1 %29 }
 0x100   :  { %v42_v19 = vmul.f32 0.003125, %v30_v18 }
 0x101   :  { %v41_v20 = vpop.xlane.xlu2 %40  ;;  %v64_v21 = vsub.f32 %v20_v5, %v27_v17 }
 0x102   :  { %v43_v22 = vsub.f32 %v27_v17, %v42_v19  ;;  %v44_v23 = vmul.f32 0.9, %v41_v20 }
 0x103   :  { %65 = vst.msk [vmem:[#allocation2] sm:$0xff] %vm16_vm0, %v64_v21 }
 0x104   :  { %v45_v24 = vsub.f32 %v43_v22, %v44_v23  ;;  %78 = dma.vmem_to_hbm [thread:$0]  %s74_s1, 128, %s76_s18, [#allocation3]  }
 0x106   :  { %v54_v25 = vsel %vm53_vm2, %v45_v24, 0.0 }
 0x107   :  { %55 = vadd.xlane.f32.xlu2 %v54_v25 }
 0x17a   :  { %v56_v26 = vpop.xlane.xlu2 %55 }
 0x17b   :  { %v57_v27 = vrot.slane %v56_v26, 4 }
 0x17d   :  { %v58_v28 = vadd.f32 %v57_v27, %v56_v26 }
 0x17f   :  { %v59_v29 = vrot.slane %v58_v28, 2 }
 0x181   :  { %v60_v30 = vadd.f32 %v59_v29, %v58_v28 }
 0x183   :  { %v61_v31 = vrot.slane %v60_v30, 1 }
 0x185   :  { %v62_v32 = vadd.f32 %v61_v31, %v60_v30 }
 0x187   :  { %100 = vpush %v62_v32 }
 0x1b8   :  { %s101_s24 = spop %100 }
 0x1b9   :  { %v66_v33 = vstv %s101_s24 }
 0x1ba   :  { %67 = vst [vmem:[#allocation4] sm:$0x1] %v66_v33 }
 0x1bb   :  { %89 = dma.vmem_to_hbm [thread:$0]  %s85_s20, 16, %s87_s23, [#allocation5]  }
 0x1bc   :  { %158 = dma.done.wait [#allocation3], 128  }
 0x1bd   :  { %159 = vsyncadd [#allocation3], 4294967168 }
 0x1be   :  { %160 = dma.done.wait [#allocation5], 16  }
 0x1bf   :  { %161 = vsyncadd [#allocation5], 4294967280 }
 0x1c0   :  { %98 = vsyncpa [#allocation3], 1 }
 0x1c1   :  { %99 = vsyncpa [#allocation5], 1 }

</bundles_post_ra>
